<compile_context>
chip_gen: v6e
topology: v6e:2x2x1
jax: 0.10.0
libtpu: 0.0.40
codegen_flags: <defaults>
</compile_context>

<pallas_src>
import numpy as np
import jax
import jax.numpy as jnp
from jax.experimental import pallas as pl
from jax.experimental.pallas import tpu as pltpu


# ---------------------------------------------------------------------------
# Kernel
# ---------------------------------------------------------------------------
def widedeep_kernel(emb_ref, wide_ref, w1_ref, b1_ref, w2_ref, b2_ref,
                    w3_ref, out_ref):
    # deep path: Linear -> ReLU -> Linear -> ReLU (MXU, f32 accumulation;
    # bias/ReLU stay in f32 -- safe on v5e which has no bf16 VPU).
    h = jnp.dot(emb_ref[...], w1_ref[...],
                preferred_element_type=jnp.float32) + b1_ref[...]
    h = jnp.maximum(h, 0.0).astype(w2_ref.dtype)
    h = jnp.dot(h, w2_ref[...],
                preferred_element_type=jnp.float32) + b2_ref[...]
    h = jnp.maximum(h, 0.0)                                      # (bB, D2) f32

    # final (D2 -> 1) layer as an NT matmul (contract last dims) so the
    # per-row result lands lane-major as (1, block_b): lane-dense store, no
    # sublane->lane relayout needed.  w3 bias (b3) is folded into `wide`.
    deep = jax.lax.dot_general(
        w3_ref[...], h, dimension_numbers=(((1,), (1,)), ((), ())),
        preferred_element_type=jnp.float32)                      # (1, block_b)

    # wide path (per-row FeaturesLinear sum + global bias + b3), precomputed
    # lane-dense in the wrapper.
    out_ref[...] = jax.nn.sigmoid(deep + wide_ref[...])


# ---------------------------------------------------------------------------
# Tiling helpers
# ---------------------------------------------------------------------------
def _round_up(x, m):
    return (x + m - 1) // m * m


def _cdiv(a, b):
    return (a + b - 1) // b


def _vmem_cap_bytes():
    """Per-generation scoped-VMEM cap (headroom under physical VMEM:
    v7x has 64 MiB per TensorCore, v5e/v6e have 128 MiB)."""
    try:
        kind = jax.devices()[0].device_kind.lower()
    except Exception:
        kind = ""
    return (48 << 20) if "v7" in kind else (96 << 20)


def _block_budget(FK, D1, D2, itemsize):
    """Approximate VMEM bytes: (constant weight blocks, per-batch-row bytes)."""
    # weight blocks are constant-index but still double-buffered by the pipeline
    weight_bytes = 2 * (itemsize * (FK * D1 + D1 * D2) + 4 * 8 * (D1 + 2 * D2))
    # per batch-row: emb block (x2 buffers) + lane-dense f32 wide/out blocks
    # (8-sublane padded, x2 buffers each) + f32 h1/h2 intermediates
    per_row = 2 * itemsize * FK + 2 * 2 * 4 * 8 + 4 * (D1 + D2)
    return weight_bytes, per_row


def _pick_block_b(FK, D1, D2, itemsize, budget_bytes, target=4096):
    """Largest batch tile (multiple of 128, <= target) fitting the budget."""
    weight_bytes, per_row = _block_budget(FK, D1, D2, itemsize)
    avail = max(budget_bytes - weight_bytes, 128 * per_row)
    bb = min(target, avail // per_row)
    return max(128, (int(bb) // 128) * 128)


# ---------------------------------------------------------------------------
# Wrapper
# ---------------------------------------------------------------------------
def widedeep_forward(users_feat, items_feat, params, *, block_b=None,
                     compute_dtype=jnp.bfloat16):
    """Eval-mode WideAndDeep forward; returns sigmoid scores of shape (B,).

    compute_dtype applies only to the embedding / W1 / W2 streams (dots still
    accumulate in f32); pass jnp.float32 to match the f32 reference closely.
    """
    # --- glue: concat fields, offset indices, gather table rows (XLA) --------
    x = jnp.concatenate([users_feat, items_feat], axis=1)               # (B, F)
    idx = x + params["offsets"][None, :]                                # (B, F)
    B, F = idx.shape
    K = params["emb_table"].shape[1]
    FK = F * K

    emb_flat = jnp.take(params["emb_table"], idx, axis=0) \
                  .reshape(B, FK).astype(compute_dtype)                 # (B, FK)

    # wide path + both scalar biases folded into a single per-row f32 value
    wide = (jnp.sum(jnp.take(params["lin_table"][:, 0], idx, axis=0), axis=1)
            + params["lin_bias"][0] + params["b3"][0, 0]).astype(jnp.float32)

    W1 = params["W1"].astype(compute_dtype)
    W2 = params["W2"].astype(compute_dtype)
    b1 = params["b1"].astype(jnp.float32)
    b2 = params["b2"].astype(jnp.float32)
    w3row = params["W3"].T.astype(jnp.float32)                          # (1, D2)
    D1, D2 = W1.shape[1], W2.shape[1]
    itemsize = jnp.dtype(compute_dtype).itemsize

    # --- batch tiling --------------------------------------------------------
    vmem_cap = _vmem_cap_bytes()
    if block_b is None:
        block_b = _pick_block_b(FK, D1, D2, itemsize,
                                budget_bytes=vmem_cap - (8 << 20))
        # guarantee >= 2 grid steps when the batch allows it so both v7x
        # TensorCores get work (no effect on single-core v5e/v6e).
        n_blk = max(1 if B <= 128 else 2, _cdiv(B, block_b))
        block_b = min(block_b, _round_up(_cdiv(B, n_blk), 128))
    block_b = max(128, _round_up(int(block_b), 128))
    B_pad = _round_up(B, block_b)
    grid = (B_pad // block_b,)

    if B_pad != B:
        pad = B_pad - B
        emb_flat = jnp.pad(emb_flat, ((0, pad), (0, 0)))
        wide = jnp.pad(wide, ((0, pad),))
    wide = wide.reshape(1, B_pad)                        # lane-dense (1, B_pad)

    # vmem limit derived from actual block bytes (+50% & 4 MiB headroom),
    # capped per generation.
    weight_bytes, per_row = _block_budget(FK, D1, D2, itemsize)
    est = weight_bytes + per_row * block_b
    vmem_limit = int(min(vmem_cap, max(est * 3 // 2 + (4 << 20), 16 << 20)))

    out = pl.pallas_call(
        widedeep_kernel,
        out_shape=jax.ShapeDtypeStruct((1, B_pad), jnp.float32),
        grid_spec=pltpu.PrefetchScalarGridSpec(
            num_scalar_prefetch=0,
            grid=grid,
            in_specs=[
                pl.BlockSpec((block_b, FK), lambda i: (i, 0)),   # embeddings
                pl.BlockSpec((1, block_b), lambda i: (0, i)),    # wide (+biases)
                pl.BlockSpec(W1.shape, lambda i: (0, 0)),
                pl.BlockSpec(b1.shape, lambda i: (0, 0)),
                pl.BlockSpec(W2.shape, lambda i: (0, 0)),
                pl.BlockSpec(b2.shape, lambda i: (0, 0)),
                pl.BlockSpec(w3row.shape, lambda i: (0, 0)),
            ],
            out_specs=pl.BlockSpec((1, block_b), lambda i: (0, i)),
        ),
        compiler_params=pltpu.CompilerParams(
            dimension_semantics=("parallel",),
            vmem_limit_bytes=vmem_limit),
    )(emb_flat, wide, W1, b1, W2, b2, w3row)
    return out[0, :B]                                                    # (B,)


# ---------------------------------------------------------------------------
# Params / reference
# ---------------------------------------------------------------------------
def init_params(field_dims, n_factors, mlp_dims, key):
    total = int(np.sum(field_dims))
    num_fields = len(field_dims)
    embed_output_dim = num_fields * n_factors
    keys = jax.random.split(key, 4 + 2 * (len(mlp_dims) + 1))

    def xavier_normal(k, shape):
        fan_in, fan_out = shape
        std = (2.0 / (fan_in + fan_out)) ** 0.5
        return std * jax.random.normal(k, shape, jnp.float32)

    params = {
        "emb_table": xavier_normal(keys[0], (total, n_factors)),
        "lin_table": xavier_normal(keys[1], (total, 1)),
        "lin_bias": jnp.zeros((1,), jnp.float32),
        "offsets": jnp.asarray(
            np.concatenate([[0], np.cumsum(field_dims)[:-1]]), jnp.int32),
    }
    dims = [embed_output_dim] + list(mlp_dims) + [1]
    names = ["W1", "W2", "W3"]
    bnames = ["b1", "b2", "b3"]
    for li, (din, dout) in enumerate(zip(dims[:-1], dims[1:])):
        params[names[li]] = 0.1 * jax.random.normal(
            keys[2 + li], (din, dout), jnp.float32)
        params[bnames[li]] = jnp.zeros((1, dout), jnp.float32)
    return params


def widedeep_reference(users_feat, items_feat, params):
    """Pure-JAX reference mirroring the PyTorch forward (eval mode)."""
    hp = jax.lax.Precision.HIGHEST
    x = jnp.concatenate([users_feat, items_feat], axis=1)
    idx = x + params["offsets"][None, :]
    emb = jnp.take(params["emb_table"], idx, axis=0)
    B = emb.shape[0]
    emb_flat = emb.reshape(B, -1)
    wide = jnp.sum(jnp.take(params["lin_table"], idx, axis=0), axis=1) \
        + params["lin_bias"]                                             # (B, 1)
    h = jnp.maximum(jnp.dot(emb_flat, params["W1"], precision=hp)
                    + params["b1"], 0.0)
    h = jnp.maximum(jnp.dot(h, params["W2"], precision=hp)
                    + params["b2"], 0.0)
    deep = jnp.dot(h, params["W3"], precision=hp) + params["b3"]
    return jax.nn.sigmoid((wide + deep)[:, 0])


# ---------------------------------------------------------------------------
if __name__ == "__main__":
    # small, module-consistent shapes (2 user fields + 2 item fields)
    field_dims = (50, 40, 30, 20)
    n_factors = 16
    mlp_dims = (64, 32)
    dropout = 0.2                      # eval mode -> identity
    B = 200

    key = jax.random.PRNGKey(0)
    kp, k0, k1, k2, k3 = jax.random.split(key, 5)
    params = init_params(field_dims, n_factors, mlp_dims, kp)

    users_feat = jnp.concatenate(
        [jax.random.randint(k0, (B, 1), 0, field_dims[0], dtype=jnp.int32),
         jax.random.randint(k1, (B, 1), 0, field_dims[1], dtype=jnp.int32)],
        axis=1)
    items_feat = jnp.concatenate(
        [jax.random.randint(k2, (B, 1), 0, field_dims[2], dtype=jnp.int32),
         jax.random.randint(k3, (B, 1), 0, field_dims[3], dtype=jnp.int32)],
        axis=1)

    y_ref = widedeep_reference(users_feat, items_feat, params)

    # f32 streams, auto tiling: block_b=128 -> 2 "parallel" grid steps (200->256)
    y_f32 = jax.block_until_ready(
        widedeep_forward(users_feat, items_feat, params,
                         compute_dtype=jnp.float32))
    np.testing.assert_allclose(np.asarray(y_f32), np.asarray(y_ref),
                               rtol=2e-3, atol=2e-3)

    # default bf16 streams (f32 accumulation), forced single 256-row tile
    y_bf16 = jax.block_until_ready(
        widedeep_forward(users_feat, items_feat, params, block_b=256))
    np.testing.assert_allclose(np.asarray(y_bf16), np.asarray(y_ref),
                               rtol=3e-2, atol=3e-2)

    print("KERNEL_OK")
</pallas_src>

<mosaic_0001>
module attributes {stable_mosaic.version = 11 : i64} {
  func.func @widedeep_kernel(%arg0: i32, %arg1: memref<128x64xf32, #tpu.memory_space<vmem>>, %arg2: memref<1x128xf32, #tpu.memory_space<vmem>>, %arg3: memref<64x64xf32, #tpu.memory_space<vmem>>, %arg4: memref<1x64xf32, #tpu.memory_space<vmem>>, %arg5: memref<64x32xf32, #tpu.memory_space<vmem>>, %arg6: memref<1x32xf32, #tpu.memory_space<vmem>>, %arg7: memref<1x32xf32, #tpu.memory_space<vmem>>, %arg8: memref<1x128xf32, #tpu.memory_space<vmem>>) attributes {dimension_semantics = [#tpu.dimension_semantics<parallel>], iteration_bounds = array<i64: 2>, scalar_prefetch = 0 : i64, scratch_operands = 0 : i64, tpu.core_type = #tpu.core_type<tc>, window_params = [{transform_indices = @transform_0, window_bounds = array<i64: 128, 64>}, {transform_indices = @transform_1, window_bounds = array<i64: 1, 128>}, {pipeline_mode = #tpu.pipeline_mode<synchronous>, transform_indices = @transform_2, window_bounds = array<i64: 64, 64>}, {pipeline_mode = #tpu.pipeline_mode<synchronous>, transform_indices = @transform_3, window_bounds = array<i64: 1, 64>}, {pipeline_mode = #tpu.pipeline_mode<synchronous>, transform_indices = @transform_4, window_bounds = array<i64: 64, 32>}, {pipeline_mode = #tpu.pipeline_mode<synchronous>, transform_indices = @transform_5, window_bounds = array<i64: 1, 32>}, {pipeline_mode = #tpu.pipeline_mode<synchronous>, transform_indices = @transform_6, window_bounds = array<i64: 1, 32>}, {transform_indices = @transform_7, window_bounds = array<i64: 1, 128>}]} {
    %c0 = arith.constant 0 : index
    %c0_0 = arith.constant 0 : index
    %0 = vector.load %arg1[%c0, %c0_0] : memref<128x64xf32, #tpu.memory_space<vmem>>, vector<128x64xf32>
    %c0_1 = arith.constant 0 : index
    %c0_2 = arith.constant 0 : index
    %1 = vector.load %arg3[%c0_1, %c0_2] : memref<64x64xf32, #tpu.memory_space<vmem>>, vector<64x64xf32>
    %cst = arith.constant dense<0.000000e+00> : vector<128x64xf32>
    %2 = tpu.matmul %0, %1, %cst {dimension_numbers = #tpu.dot_dimension_numbers<[1], [0], [0], [1], [0, 0, 1, 1], [], []>} : vector<128x64xf32>, vector<64x64xf32>, vector<128x64xf32> -> vector<128x64xf32>
    %c0_3 = arith.constant 0 : index
    %c0_4 = arith.constant 0 : index
    %3 = vector.load %arg4[%c0_3, %c0_4] : memref<1x64xf32, #tpu.memory_space<vmem>>, vector<1x64xf32>
    %4 = vector.broadcast %3 : vector<1x64xf32> to vector<128x64xf32>
    %5 = arith.addf %2, %4 : vector<128x64xf32>
    %cst_5 = arith.constant 0.000000e+00 : f32
    %6 = vector.broadcast %cst_5 : f32 to vector<128x64xf32>
    %7 = arith.maximumf %5, %6 : vector<128x64xf32>
    %c0_6 = arith.constant 0 : index
    %c0_7 = arith.constant 0 : index
    %8 = vector.load %arg5[%c0_6, %c0_7] : memref<64x32xf32, #tpu.memory_space<vmem>>, vector<64x32xf32>
    %cst_8 = arith.constant dense<0.000000e+00> : vector<128x32xf32>
    %9 = tpu.matmul %7, %8, %cst_8 {dimension_numbers = #tpu.dot_dimension_numbers<[1], [0], [0], [1], [0, 0, 1, 1], [], []>} : vector<128x64xf32>, vector<64x32xf32>, vector<128x32xf32> -> vector<128x32xf32>
    %c0_9 = arith.constant 0 : index
    %c0_10 = arith.constant 0 : index
    %10 = vector.load %arg6[%c0_9, %c0_10] : memref<1x32xf32, #tpu.memory_space<vmem>>, vector<1x32xf32>
    %11 = vector.broadcast %10 : vector<1x32xf32> to vector<128x32xf32>
    %12 = arith.addf %9, %11 : vector<128x32xf32>
    %cst_11 = arith.constant 0.000000e+00 : f32
    %13 = vector.broadcast %cst_11 : f32 to vector<128x32xf32>
    %14 = arith.maximumf %12, %13 : vector<128x32xf32>
    %c0_12 = arith.constant 0 : index
    %c0_13 = arith.constant 0 : index
    %15 = vector.load %arg7[%c0_12, %c0_13] : memref<1x32xf32, #tpu.memory_space<vmem>>, vector<1x32xf32>
    %cst_14 = arith.constant dense<0.000000e+00> : vector<1x128xf32>
    %16 = tpu.matmul %15, %14, %cst_14 {dimension_numbers = #tpu.dot_dimension_numbers<[1], [1], [0], [0], [0, 0, 1, 0], [], []>} : vector<1x32xf32>, vector<128x32xf32>, vector<1x128xf32> -> vector<1x128xf32>
    %c0_15 = arith.constant 0 : index
    %c0_16 = arith.constant 0 : index
    %17 = vector.load %arg2[%c0_15, %c0_16] : memref<1x128xf32, #tpu.memory_space<vmem>>, vector<1x128xf32>
    %18 = arith.addf %16, %17 : vector<1x128xf32>
    %19 = arith.negf %18 : vector<1x128xf32>
    %20 = math.exp %19 : vector<1x128xf32>
    %cst_17 = arith.constant 1.000000e+00 : f32
    %21 = vector.broadcast %cst_17 : f32 to vector<1x128xf32>
    %22 = arith.addf %21, %20 : vector<1x128xf32>
    %23 = arith.divf %21, %22 : vector<1x128xf32>
    %c0_18 = arith.constant 0 : index
    %c0_19 = arith.constant 0 : index
    %24 = vector.load %arg8[%c0_18, %c0_19] : memref<1x128xf32, #tpu.memory_space<vmem>>, vector<1x128xf32>
    tpu.vector_store %arg8[%c0_18, %c0_19], %23 {strides = array<i32>} : memref<1x128xf32, #tpu.memory_space<vmem>>, vector<1x128xf32>,
    return
  }
  func.func @transform_0(%arg0: i32) -> (i32, i32) {
    %c0_i32 = arith.constant 0 : i32
    %c0_i32_0 = arith.constant 0 : i32
    return %arg0, %c0_i32 : i32, i32
  }
  func.func @transform_1(%arg0: i32) -> (i32, i32) {
    %c0_i32 = arith.constant 0 : i32
    %c0_i32_0 = arith.constant 0 : i32
    return %c0_i32, %arg0 : i32, i32
  }
  func.func @transform_2(%arg0: i32) -> (i32, i32) {
    %c0_i32 = arith.constant 0 : i32
    %c0_i32_0 = arith.constant 0 : i32
    %c0_i32_1 = arith.constant 0 : i32
    return %c0_i32, %c0_i32_0 : i32, i32
  }
  func.func @transform_3(%arg0: i32) -> (i32, i32) {
    %c0_i32 = arith.constant 0 : i32
    %c0_i32_0 = arith.constant 0 : i32
    %c0_i32_1 = arith.constant 0 : i32
    return %c0_i32, %c0_i32_0 : i32, i32
  }
  func.func @transform_4(%arg0: i32) -> (i32, i32) {
    %c0_i32 = arith.constant 0 : i32
    %c0_i32_0 = arith.constant 0 : i32
    %c0_i32_1 = arith.constant 0 : i32
    return %c0_i32, %c0_i32_0 : i32, i32
  }
  func.func @transform_5(%arg0: i32) -> (i32, i32) {
    %c0_i32 = arith.constant 0 : i32
    %c0_i32_0 = arith.constant 0 : i32
    %c0_i32_1 = arith.constant 0 : i32
    return %c0_i32, %c0_i32_0 : i32, i32
  }
  func.func @transform_6(%arg0: i32) -> (i32, i32) {
    %c0_i32 = arith.constant 0 : i32
    %c0_i32_0 = arith.constant 0 : i32
    %c0_i32_1 = arith.constant 0 : i32
    return %c0_i32, %c0_i32_0 : i32, i32
  }
  func.func @transform_7(%arg0: i32) -> (i32, i32) {
    %c0_i32 = arith.constant 0 : i32
    %c0_i32_0 = arith.constant 0 : i32
    return %c0_i32, %arg0 : i32, i32
  }
}

</mosaic_0001>

<bundles_post_ra>
// kernel: tpu_custom_call.1
= control target key start
LH: loop header
LB: loop body
LE: loop exit
PB: predicated region body
PF: predicated region fallthrough
CT: control target
= control target key end

     0   :  { %12 = vsyncpa [#allocation3], 0  ;;  %s1607_s0 = inlined_call_operand.vmem [shape: f32[256,64], index: 0, kind: input, shape index: {}]   ;;  %s1608_s1 = inlined_call_operand.vmem [shape: f32[1,256], index: 1, kind: input, shape index: {}]   ;;  %s1609_s2 = inlined_call_operand.vmem [shape: f32[64,64], index: 2, kind: input, shape index: {}]   ;;  %s1610_s3 = inlined_call_operand.vmem [shape: f32[1,64], index: 3, kind: input, shape index: {}]   ;;  %s1611_s4 = inlined_call_operand.vmem [shape: f32[64,32], index: 4, kind: input, shape index: {}]   ;;  %s1612_s5 = inlined_call_operand.vmem [shape: f32[1,32], index: 5, kind: input, shape index: {}]   ;;  %s1613_s6 = inlined_call_operand.vmem [shape: f32[1,32], index: 6, kind: input, shape index: {}]   ;;  %s1614_s7 = inlined_call_operand.hbm [shape: f32[1,256], index: 7, kind: output, shape index: {}]  }
   0x1   :  { %14 = vsyncpa [#allocation3 + $0x1], 0  ;;  %s1356_s24 = smov 0   ;;  %s1358_s25 = smov 0  }
   0x2   :  { %s1360_s26 = smov 0   ;;  %s1362_s27 = smov 0  }
   0x3 LB: > { %s1377_s28 = sadd.s32 4294967295, %s1311_s27   ;;  %s965_s29 = sadd.s32 4294967294, %s1311_s27   ;;  %s1311_s27 = sphi %s1362_s27, %s1620_s27   ;;  %s1307_s26 = sphi %s1360_s26, %s1619_s26   ;;  %s1303_s25 = sphi %s1358_s25, %s1618_s25   ;;  %s1299_s24 = sphi %s1356_s24, %s1617_s24  }
   0x4   : > { %s1381_s30 = sadd.s32 1, %s1311_s27   ;;  %s184_s8 = sadd.s32 1, %s1307_s26 }
   0x5   : > { %s181_s9 = ssub.s32 %s1311_s27, %s1381_s30  ;;  %p194_p0 = scmp.ne.s32.totalorder %s1307_s26, %s1303_s25 }
   0x6   : > { %p182_p1 = scmp.eq.s32.totalorder %s181_s9, 0  ;;  %p195_p2 = scmp.eq.s32.totalorder %s1377_s28, 1 }
   0x7   : > { %p200_p3 = scmp.ne.s32.totalorder %s1303_s25, %s1299_s24  ;;  %p201_p4 = scmp.eq.s32.totalorder %s965_s29, 1 }
   0x8   : > { %s1392_s10 = scalar_select %p182_p1, %s1307_s26, %s184_s8  }
   0x9   : > { %p1394_p5 = por %p195_p2, %p194_p0  ;;  %p1398_p6 = por %p201_p4, %p200_p3 }
   0xa   : > { %p968_p7 = scmp.ge.s32.totalorder %s1311_s27, 1  ;;  %p249_p8 = scmp.lt.s32.totalorder %s1311_s27, 3 }
   0xc   : > { %p250_p9 = pnand %p968_p7, %p249_p8 }
   0xd   : > { %s1411_s17 = sshll.u32 (!%p250_p9), %s1377_s28, 4  ;;  %p289_p11 = scmp.lt.s32.totalorder (!%p250_p9), %s1377_s28, 1 }
   0xe   : > { %253 = sbr.rel (%p250_p9) target bundleno = 764 (0x2fc), region = 48  ;;  %p284_p10 = scmp.lt.s32.totalorder (!%p250_p9), %s1411_s17, 31 }
   0xf   : > { %s281_s22 = sand.u32 (!%p250_p9), 1, %s1303_s25   ;;  %s1572_s13 = scalar_lea.hbm (!%p250_p9), %s1614_s7, %s1411_s17 }
  0x10   : > { %s1315_s15 = smov (!%p250_p9), [#allocation2]  }
  0x11   : > { %s1255_s16 = sshll.u32 (!%p250_p9), %s1315_s15, 4  ;;  %s1256_s16 = int_to_ptr.vmem [resolvable:$false] %s1255_s16 }
  0x12   : > { %s1257_s18 = scalar_lea.vmem (!%p250_p9), %s1256_s16, 32 }
  0x13   : > { %v315_v0 = vld [vmem:[%s1609_s2 + $0x38] sm:$0xff]  ;;  %v314_v1 = vld [vmem:[%s1609_s2 + $0x30] sm:$0xff]  ;;  %v313_v2 = vld [vmem:[%s1609_s2 + $0x28] sm:$0xff]  ;;  %s285_s20 = scalar_select %p284_p10, %s1411_s17, 31  ;;  %vm323_vm0 = vcmask 523264   ;;  %vm1314_vm1 = vmmov 0  }
  0x14   : > { %1091 = vmatprep.subr.mxu1 %v315_v0  ;;  %v312_v3 = vld [vmem:[%s1609_s2 + $0x20] sm:$0xff]  ;;  %v311_v4 = vld [vmem:[%s1609_s2 + $0x18] sm:$0xff]  ;;  %v310_v6 = vld [vmem:[%s1609_s2 + $0x10] sm:$0xff]  ;;  %vm759_vm2 = vcmask 261120   ;;  %s1622_s28 = smov (!%p289_p11, %s1377_s28), 1 }
  0x15   : > { %1092 = vmatpush3.msra.mxu1 %v315_v0  ;;  %s970_s23 = sshll.u32 %s285_s20, 3  ;;  %v309_v7 = vld [vmem:[%s1609_s2 + $0x8] sm:$0xff]  ;;  %v308_v8 = vld [vmem:[%s1609_s2] sm:$0xff]  ;;  %v540_v10 = vld [vmem:[%s1611_s4 + $0x38] sm:$0xff]  ;;  %s291_s21 = scalar_lea.vmem %s1608_s1, %s1622_s28 }
  0x16   : > { %1093 = vmatprep.subr.mxu1 %v314_v1  ;;  %s1427_s14 = scalar_lea.vmem %s1607_s0, %s970_s23  ;;  %v539_v12 = vld [vmem:[%s1611_s4 + $0x30] sm:$0xff]  ;;  %v538_v14 = vld [vmem:[%s1611_s4 + $0x28] sm:$0xff]  ;;  %v537_v16 = vld [vmem:[%s1611_s4 + $0x20] sm:$0xff]  ;;  %s282_s23 = scalar_lea.vmem [#allocation2], %s281_s22 }
  0x17   : > { %1094 = vmatpush3.msra.mxu1 %v314_v1  ;;  %v292_v5 = vld [vmem:[%s1427_s14] sm:$0xff]  ;;  %v293_v9 = vld [vmem:[%s1427_s14 + $0x8] sm:$0xff]  ;;  %v294_v11 = vld [vmem:[%s1427_s14 + $0x10] sm:$0xff]  ;;  %s901_s29 = sshll.u32 %s282_s23, 4  ;;  %s889_s28 = scalar_lea.sflag [#allocation3], %s281_s22  ;;  %s902_s29 = int_to_ptr.vmem [resolvable:$true] %s901_s29 }
  0x18   : > { %1095 = vmatprep.subr.mxu1 %v313_v2  ;;  %1107 = vmatprep.mubr.msk.f32.mxu1 %vm323_vm0, %v292_v5  ;;  %v295_v13 = vld [vmem:[%s1427_s14 + $0x18] sm:$0xff]  ;;  %v296_v15 = vld [vmem:[%s1427_s14 + $0x20] sm:$0xff]  ;;  %v297_v17 = vld [vmem:[%s1427_s14 + $0x28] sm:$0xff]  ;;  %p1258_p1 = scmp.lt.s32.totalorder %s902_s29, %s1256_s16 }
  0x19   : > { %1096 = vmatpush3.msra.mxu1 %v313_v2  ;;  %v536_v18 = vld [vmem:[%s1611_s4 + $0x18] sm:$0xff]  ;;  %v298_v19 = vld [vmem:[%s1427_s14 + $0x30] sm:$0xff]  ;;  %v534_v22 = vld [vmem:[%s1611_s4 + $0x8] sm:$0xff] }
  0x1a   : > { %1097 = vmatprep.subr.mxu1 %v312_v3  ;;  %v535_v20 = vld [vmem:[%s1611_s4 + $0x10] sm:$0xff]  ;;  %v299_v21 = vld [vmem:[%s1427_s14 + $0x38] sm:$0xff]  ;;  %v300_v23 = vld [vmem:[%s1427_s14 + $0x40] sm:$0xff] }
  0x1b   : > { %1098 = vmatpush3.msra.mxu1 %v312_v3  ;;  %v301_v24 = vld [vmem:[%s1427_s14 + $0x48] sm:$0xff]  ;;  %v302_v25 = vld [vmem:[%s1427_s14 + $0x50] sm:$0xff]  ;;  %v303_v26 = vld [vmem:[%s1427_s14 + $0x58] sm:$0xff] }
  0x1c   : > { %1099 = vmatprep.subr.mxu1 %v311_v4  ;;  %v304_v27 = vld [vmem:[%s1427_s14 + $0x60] sm:$0xff]  ;;  %v305_v28 = vld [vmem:[%s1427_s14 + $0x68] sm:$0xff]  ;;  %v306_v29 = vld [vmem:[%s1427_s14 + $0x70] sm:$0xff] }
  0x1d   : > { %1100 = vmatpush3.msra.mxu1 %v311_v4  ;;  %v307_v30 = vld [vmem:[%s1427_s14 + $0x78] sm:$0xff]  ;;  %v533_v31 = vld [vmem:[%s1611_s4] sm:$0xff]  ;;  %s1251_s14 = scalar_lea.vmem %s902_s29, 16 }
  0x1e   : > { %1101 = vmatprep.subr.mxu1 %v310_v6  ;;  %v971_v32 = vld [vmem:[%s1610_s3] ss:$0 sm:$0xff]  ;;  %p1252_p12 = scmp.ne.s32.totalorder %s902_s29, %s1251_s14  ;;  %p1259_p2 = scmp.lt.s32.totalorder %s1257_s18, %s1251_s14 }
  0x1f   : > { %1102 = vmatpush3.msra.mxu1 %v310_v6 }
  0x20   : > { %1103 = vmatprep.subr.mxu1 %v309_v7  ;;  %p1253_p13 = pnand %p1252_p12, %p1394_p5  ;;  %p1260_p3 = por %p1259_p2, %p1258_p1 }
  0x21   : > { %1104 = vmatpush3.msra.mxu1 %v309_v7 }
  0x22   : > { %1105 = vmatprep.subr.mxu1 %v308_v8  ;;  %p1254_p0 = pneg %p1253_p13 }
  0x23   : > { %1106 = vmatpush3.msra.mxu1 %v308_v8 }
  0x24   : > { %1108 = vmatmul.mubr.msk.f32.vlgmr.msra.gmra.mxu1 %vm323_vm0, %v293_v9  ;;  %1131 = vmatprep.subr.mxu1 %v540_v10  ;;  %p1261_p4 = pnand %p1260_p3, %p1254_p0 }
  0x25   : > { %1110 = vmatprep.mubr.msk.f32.mxu1 %vm323_vm0, %v294_v11  ;;  %1132 = vmatpush3.msra.mxu1 %v540_v10 }
  0x26   : > { %1133 = vmatprep.subr.mxu1 %v539_v12 }
  0x27   : > { %1134 = vmatpush3.msra.mxu1 %v539_v12 }
  0x28   : > { %1111 = vmatmul.mubr.msk.f32.gmra.mxu1 %vm323_vm0, %v295_v13  ;;  %1135 = vmatprep.subr.mxu1 %v538_v14 }
  0x29   : > { %1113 = vmatprep.mubr.msk.f32.mxu1 %vm323_vm0, %v296_v15  ;;  %1136 = vmatpush3.msra.mxu1 %v538_v14 }
  0x2a   : > { %1137 = vmatprep.subr.mxu1 %v537_v16 }
  0x2b   : > { %1138 = vmatpush3.msra.mxu1 %v537_v16 }
  0x2c   : > { %1114 = vmatmul.mubr.msk.f32.gmra.mxu1 %vm323_vm0, %v297_v17  ;;  %1139 = vmatprep.subr.mxu1 %v536_v18  ;;  %v1313_v17 = vmov 0.0  }
  0x2d   : > { %1116 = vmatprep.mubr.msk.f32.mxu1 %vm323_vm0, %v298_v19  ;;  %1140 = vmatpush3.msra.mxu1 %v536_v18 }
  0x2e   : > { %1141 = vmatprep.subr.mxu1 %v535_v20  ;;  %1171 = vmatprep.subr.mxu0 %v1313_v17 }
  0x2f   : > { %1142 = vmatpush3.msra.mxu1 %v535_v20  ;;  %1203 = vmatprep.mubr.msk.f32.mxu0 %vm1314_vm1, %v1313_v17 }
  0x30   : > { %1117 = vmatmul.mubr.msk.f32.gmra.mxu1 %vm323_vm0, %v299_v21  ;;  %1143 = vmatprep.subr.mxu1 %v534_v22 }
  0x31   : > { %1119 = vmatprep.mubr.msk.f32.mxu1 %vm323_vm0, %v300_v23  ;;  %1144 = vmatpush3.msra.mxu1 %v534_v22 }
  0x32   : > { %1145 = vmatprep.subr.mxu1 %v533_v31 }
  0x33   : > { %1146 = vmatpush3.msra.mxu1 %v533_v31 }
  0x34   : > { %1120 = vmatmul.mubr.msk.f32.gmra.mxu1 %vm323_vm0, %v301_v24 }
  0x35   : > { %1122 = vmatprep.mubr.msk.f32.mxu1 %vm323_vm0, %v302_v25 }
  0x38   : > { %1123 = vmatmul.mubr.msk.f32.gmra.mxu1 %vm323_vm0, %v303_v26 }
  0x39   : > { %1125 = vmatprep.mubr.msk.f32.mxu1 %vm323_vm0, %v304_v27 }
  0x3c   : > { %1126 = vmatmul.mubr.msk.f32.gmra.mxu1 %vm323_vm0, %v305_v28 }
  0x3d   : > { %1128 = vmatprep.mubr.msk.f32.mxu1 %vm323_vm0, %v306_v29 }
  0x40   : > { %1129 = vmatmul.mubr.msk.f32.gmra.mxu1 %vm323_vm0, %v307_v30 }
  0xe4   : > { %v1109_v33 = vpop.f32.mrf.mxu1 }
  0xe5   : > { %v444_v34 = vadd.f32 %v1109_v33, %v971_v32 }
  0xe6   : > { %v438_v35 = vpop.f32.mrf.mxu1 }
  0xe7   : > { %v439_v36 = vadd.f32 %v971_v32, %v438_v35  ;;  %v518_v39 = vmax.f32 %v444_v34, 0.0 }
  0xe8   : > { %v1112_v37 = vpop.f32.mrf.mxu1 }
  0xe9   : > { %v517_v38 = vmax.f32 %v439_v36, 0.0  ;;  %v454_v40 = vadd.f32 %v1112_v37, %v971_v32 }
  0xea   : > { %v448_v41 = vpop.f32.mrf.mxu1 }
  0xeb   : > { %v449_v42 = vadd.f32 %v971_v32, %v448_v41  ;;  %1147 = vmatprep.mubr.msk.f32.mxu1 %vm323_vm0, %v517_v38  ;;  %v520_v45 = vmax.f32 %v454_v40, 0.0 }
  0xec   : > { %v1115_v43 = vpop.f32.mrf.mxu1  ;;  %1148 = vmatmul.mubr.msk.f32.vlgmr.msra.gmra.mxu1 %vm323_vm0, %v518_v39 }
  0xed   : > { %v519_v44 = vmax.f32 %v449_v42, 0.0  ;;  %v464_v46 = vadd.f32 %v1115_v43, %v971_v32 }
  0xee   : > { %v458_v47 = vpop.f32.mrf.mxu1 }
  0xef   : > { %v459_v48 = vadd.f32 %v971_v32, %v458_v47  ;;  %1150 = vmatprep.mubr.msk.f32.mxu1 %vm323_vm0, %v519_v44  ;;  %v522_v51 = vmax.f32 %v464_v46, 0.0 }
  0xf0   : > { %v1118_v49 = vpop.f32.mrf.mxu1  ;;  %1151 = vmatmul.mubr.msk.f32.gmra.mxu1 %vm323_vm0, %v520_v45 }
  0xf1   : > { %v521_v50 = vmax.f32 %v459_v48, 0.0  ;;  %v474_v52 = vadd.f32 %v1118_v49, %v971_v32 }
  0xf2   : > { %v468_v53 = vpop.f32.mrf.mxu1 }
  0xf3   : > { %v469_v54 = vadd.f32 %v971_v32, %v468_v53  ;;  %1153 = vmatprep.mubr.msk.f32.mxu1 %vm323_vm0, %v521_v50  ;;  %v524_v57 = vmax.f32 %v474_v52, 0.0 }
  0xf4   : > { %v1121_v55 = vpop.f32.mrf.mxu1  ;;  %1154 = vmatmul.mubr.msk.f32.gmra.mxu1 %vm323_vm0, %v522_v51 }
  0xf5   : > { %v523_v56 = vmax.f32 %v469_v54, 0.0  ;;  %v484_v58 = vadd.f32 %v1121_v55, %v971_v32 }
  0xf6   : > { %v478_v59 = vpop.f32.mrf.mxu1 }
  0xf7   : > { %v479_v60 = vadd.f32 %v971_v32, %v478_v59  ;;  %1156 = vmatprep.mubr.msk.f32.mxu1 %vm323_vm0, %v523_v56  ;;  %v526_v63 = vmax.f32 %v484_v58, 0.0 }
  0xf8   : > { %v1124_v61 = vpop.f32.mrf.mxu1  ;;  %1157 = vmatmul.mubr.msk.f32.gmra.mxu1 %vm323_vm0, %v524_v57 }
  0xf9   : > { %v525_v62 = vmax.f32 %v479_v60, 0.0  ;;  %v494_v0 = vadd.f32 %v1124_v61, %v971_v32 }
  0xfa   : > { %v488_v1 = vpop.f32.mrf.mxu1 }
  0xfb   : > { %v489_v2 = vadd.f32 %v971_v32, %v488_v1  ;;  %1159 = vmatprep.mubr.msk.f32.mxu1 %vm323_vm0, %v525_v62  ;;  %v528_v5 = vmax.f32 %v494_v0, 0.0 }
  0xfc   : > { %v1127_v3 = vpop.f32.mrf.mxu1  ;;  %1160 = vmatmul.mubr.msk.f32.gmra.mxu1 %vm323_vm0, %v526_v63 }
  0xfd   : > { %v527_v4 = vmax.f32 %v489_v2, 0.0  ;;  %v504_v6 = vadd.f32 %v1127_v3, %v971_v32  ;;  %v757_v3 = vld [vmem:[%s1613_s6] sm:$0x1] }
  0xfe   : > { %v498_v7 = vpop.f32.mrf.mxu1 }
  0xff   : > { %v499_v8 = vadd.f32 %v971_v32, %v498_v7  ;;  %1162 = vmatprep.mubr.msk.f32.mxu1 %vm323_vm0, %v527_v4  ;;  %v530_v11 = vmax.f32 %v504_v6, 0.0  ;;  %v758_v4 = vld [vmem:[%s291_s21] sm:$0x1] }
 0x100   : > { %v1130_v9 = vpop.f32.mrf.mxu1  ;;  %1163 = vmatmul.mubr.msk.f32.gmra.mxu1 %vm323_vm0, %v528_v5 }
 0x101   : > { %v529_v10 = vmax.f32 %v499_v8, 0.0  ;;  %v514_v12 = vadd.f32 %v1130_v9, %v971_v32 }
 0x102   : > { %v508_v13 = vpop.f32.mrf.mxu1 }
 0x103   : > { %v509_v14 = vadd.f32 %v971_v32, %v508_v13  ;;  %1165 = vmatprep.mubr.msk.f32.mxu1 %vm323_vm0, %v529_v10  ;;  %v532_v16 = vmax.f32 %v514_v12, 0.0  ;;  %v988_v32 = vld [vmem:[%s1612_s5] ss:$0 sm:$0xff] }
 0x104   : > { %1166 = vmatmul.mubr.msk.f32.gmra.mxu1 %vm323_vm0, %v530_v11 }
 0x105   : > { %v531_v15 = vmax.f32 %v509_v14, 0.0 }
 0x107   : > { %1168 = vmatprep.mubr.msk.f32.mxu1 %vm323_vm0, %v531_v15 }
 0x108   : > { %1169 = vmatmul.mubr.msk.f32.gmra.mxu1 %vm323_vm0, %v532_v16 }
 0x1ac   : > { %v1515_v18 = vpop.f32.mrf.mxu1 }
 0x1ad   : > { %v668_v62 = vadd.f32 %v1515_v18, %v988_v32 }
 0x1ae   : > { %v1517_v19 = vpop.f32.mrf.mxu1 }
 0x1af   : > { %v742_v0 = vmax.f32 %v668_v62, 0.0  ;;  %v663_v1 = vadd.f32 %v988_v32, %v1517_v19 }
 0x1b0   : > { %v1152_v20 = vpop.f32.mrf.mxu1 }
 0x1b1   : > { %v678_v58 = vadd.f32 %v1152_v20, %v988_v32  ;;  %v741_v2 = vmax.f32 %v663_v1, 0.0 }
 0x1b2   : > { %v1519_v21 = vpop.f32.mrf.mxu1 }
 0x1b3   : > { %v744_v60 = vmax.f32 %v678_v58, 0.0  ;;  %v673_v61 = vadd.f32 %v988_v32, %v1519_v21 }
 0x1b4   : > { %v1155_v22 = vpop.f32.mrf.mxu1 }
 0x1b5   : > { %v688_v54 = vadd.f32 %v1155_v22, %v988_v32  ;;  %v743_v63 = vmax.f32 %v673_v61, 0.0 }
 0x1b6   : > { %v682_v23 = vpop.f32.mrf.mxu1 }
 0x1b7   : > { %v746_v56 = vmax.f32 %v688_v54, 0.0  ;;  %v683_v57 = vadd.f32 %v988_v32, %v682_v23 }
 0x1b8   : > { %v1158_v24 = vpop.f32.mrf.mxu1 }
 0x1b9   : > { %v698_v50 = vadd.f32 %v1158_v24, %v988_v32  ;;  %v745_v59 = vmax.f32 %v683_v57, 0.0 }
 0x1ba   : > { %v692_v25 = vpop.f32.mrf.mxu1 }
 0x1bb   : > { %v748_v52 = vmax.f32 %v698_v50, 0.0  ;;  %v693_v53 = vadd.f32 %v988_v32, %v692_v25 }
 0x1bc   : > { %v1161_v26 = vpop.f32.mrf.mxu1 }
 0x1bd   : > { %v708_v46 = vadd.f32 %v1161_v26, %v988_v32  ;;  %v747_v55 = vmax.f32 %v693_v53, 0.0 }
 0x1be   : > { %v702_v27 = vpop.f32.mrf.mxu1 }
 0x1bf   : > { %v750_v48 = vmax.f32 %v708_v46, 0.0  ;;  %v703_v49 = vadd.f32 %v988_v32, %v702_v27 }
 0x1c0   : > { %v1164_v28 = vpop.f32.mrf.mxu1 }
 0x1c1   : > { %v718_v42 = vadd.f32 %v1164_v28, %v988_v32  ;;  %v749_v51 = vmax.f32 %v703_v49, 0.0 }
 0x1c2   : > { %v712_v29 = vpop.f32.mrf.mxu1 }
 0x1c3   : > { %v752_v44 = vmax.f32 %v718_v42, 0.0  ;;  %v713_v45 = vadd.f32 %v988_v32, %v712_v29 }
 0x1c4   : > { %v1167_v30 = vpop.f32.mrf.mxu1 }
 0x1c5   : > { %v728_v38 = vadd.f32 %v1167_v30, %v988_v32  ;;  %v751_v47 = vmax.f32 %v713_v45, 0.0 }
 0x1c6   : > { %v722_v31 = vpop.f32.mrf.mxu1 }
 0x1c7   : > { %v754_v40 = vmax.f32 %v728_v38, 0.0  ;;  %v723_v41 = vadd.f32 %v988_v32, %v722_v31 }
 0x1c8   : > { %v1170_v33 = vpop.f32.mrf.mxu1 }
 0x1c9   : > { %v738_v34 = vadd.f32 %v1170_v33, %v988_v32  ;;  %v753_v43 = vmax.f32 %v723_v41, 0.0 }
 0x1ca   : > { %v732_v35 = vpop.f32.mrf.mxu1 }
 0x1cb   : > { %v756_v36 = vmax.f32 %v738_v34, 0.0  ;;  %v733_v37 = vadd.f32 %v988_v32, %v732_v35 }
 0x1cd   : > { %1172 = vmatpush3.xpose.msk.msra.mxu0 %vm759_vm2, %v756_v36  ;;  %v755_v39 = vmax.f32 %v733_v37, 0.0 }
 0x1ce   : > { %1173 = vmatprep.subr.mxu0 %v1313_v17 }
 0x1d1   : > { %1174 = vmatpush3.xpose.msk.msra.mxu0 %vm759_vm2, %v755_v39 }
 0x1d2   : > { %1175 = vmatprep.subr.mxu0 %v1313_v17 }
 0x1d5   : > { %1176 = vmatpush3.xpose.msk.msra.mxu0 %vm759_vm2, %v754_v40 }
 0x1d6   : > { %1177 = vmatprep.subr.mxu0 %v1313_v17 }
 0x1d9   : > { %1178 = vmatpush3.xpose.msk.msra.mxu0 %vm759_vm2, %v753_v43 }
 0x1da   : > { %1179 = vmatprep.subr.mxu0 %v1313_v17 }
 0x1dd   : > { %1180 = vmatpush3.xpose.msk.msra.mxu0 %vm759_vm2, %v752_v44 }
 0x1de   : > { %1181 = vmatprep.subr.mxu0 %v1313_v17 }
 0x1e1   : > { %1182 = vmatpush3.xpose.msk.msra.mxu0 %vm759_vm2, %v751_v47 }
 0x1e2   : > { %1183 = vmatprep.subr.mxu0 %v1313_v17 }
 0x1e5   : > { %1184 = vmatpush3.xpose.msk.msra.mxu0 %vm759_vm2, %v750_v48 }
 0x1e6   : > { %1185 = vmatprep.subr.mxu0 %v1313_v17 }
 0x1e9   : > { %1186 = vmatpush3.xpose.msk.msra.mxu0 %vm759_vm2, %v749_v51 }
 0x1ea   : > { %1187 = vmatprep.subr.mxu0 %v1313_v17 }
 0x1ed   : > { %1188 = vmatpush3.xpose.msk.msra.mxu0 %vm759_vm2, %v748_v52 }
 0x1ee   : > { %1189 = vmatprep.subr.mxu0 %v1313_v17 }
 0x1f1   : > { %1190 = vmatpush3.xpose.msk.msra.mxu0 %vm759_vm2, %v747_v55 }
 0x1f2   : > { %1191 = vmatprep.subr.mxu0 %v1313_v17 }
 0x1f5   : > { %1192 = vmatpush3.xpose.msk.msra.mxu0 %vm759_vm2, %v746_v56 }
 0x1f6   : > { %1193 = vmatprep.subr.mxu0 %v1313_v17 }
 0x1f9   : > { %1194 = vmatpush3.xpose.msk.msra.mxu0 %vm759_vm2, %v745_v59 }
 0x1fa   : > { %1195 = vmatprep.subr.mxu0 %v1313_v17 }
 0x1fd   : > { %1196 = vmatpush3.xpose.msk.msra.mxu0 %vm759_vm2, %v744_v60 }
 0x1fe   : > { %1197 = vmatprep.subr.mxu0 %v1313_v17 }
 0x201   : > { %1198 = vmatpush3.xpose.msk.msra.mxu0 %vm759_vm2, %v743_v63 }
 0x202   : > { %1199 = vmatprep.subr.mxu0 %v1313_v17 }
 0x205   : > { %1200 = vmatpush3.xpose.msk.msra.mxu0 %vm759_vm2, %v742_v0 }
 0x206   : > { %1201 = vmatprep.subr.mxu0 %v1313_v17 }
 0x209   : > { %1202 = vmatpush3.xpose.msk.msra.mxu0 %vm759_vm2, %v741_v2 }
 0x20c   : > { %1204 = vmatmul.mubr.msk.f32.vlgmr.msra.gmra.mxu0 %vm759_vm2, %v757_v3 }
 0x2cc   : > { %v877_v5 = vpop.f32.mrf.mxu0 }
 0x2cd   : > { %v878_v6 = vadd.f32 %v877_v5, %v758_v4 }
 0x2ce   : > { %v1205_v7 = vpop.f32.mrf.mxu0 }
 0x2cf   : > { %v1022_v8 = vmul.f32 -1.442695, %v878_v6 }
 0x2d1   : > { %1247 = vpow2.f32 %v1022_v8 }
 0x2de   : > { %v1248_v9 = vpop.eup %1247 }
 0x2df   : > { %v884_v10 = vadd.f32 1.0, %v1248_v9 }
 0x2e1   : > { %1249 = vrcp.f32 %v884_v10 }
 0x2ee   : > { %v1250_v11 = vpop.eup %1249 }
 0x2ef   : > { %887 = vst [vmem:[%s282_s23] sm:$0x1] %v1250_v11 }
 0x2f0   : > { %1264 = shalt.err (!%p1261_p4)
}
 0x2f1   : > { %s1265_s17 = scalar_lea.hbm %s1572_s13, 16  ;;  %s1269_s21 = scalar_lea.hbm %s1614_s7, 32 }
 0x2f2   : > { %p1266_p7 = scmp.ne.s32.totalorder %s1572_s13, %s1265_s17  ;;  %p1270_p10 = scmp.lt.s32.totalorder %s1572_s13, %s1614_s7 }
 0x2f3   : > { %p1271_p11 = scmp.lt.s32.totalorder %s1269_s21, %s1265_s17 }
 0x2f4   : > { %p1267_p8 = pnand %p1266_p7, %p1394_p5 }
 0x2f5   : > { %p1272_p12 = por %p1271_p11, %p1270_p10 }
 0x2f6   : > { %p1268_p9 = pneg %p1267_p8 }
 0x2f8   : > { %p1273_p13 = pnand %p1272_p12, %p1268_p9 }
 0x2fa   : > { %1276 = shalt.err (!%p1273_p13)
}
 0x2fb   : > { %1206 = dma.vmem_to_hbm [thread:$0]  (%p1394_p5), %s902_s29, 16, %s1572_s13, %s889_s28  }
 0x2fc PF: > { %p1212_p0 = scmp.ge.s32.totalorder %s1311_s27, 2  ;;  %s913_s8 = sand.u32 1, %s1299_s24  }
 0x2fd   : > { %s914_s9 = scalar_lea.sflag [#allocation3], %s913_s8 }
 0x2fe   : > { %p1209_p1 = pnand %p1212_p0, %p1398_p6 }
 0x300   : > { %p1210_p2 = pneg %p1209_p1 }
 0x302   : > { %1294 = dma.done.wait (%p1210_p2), %s914_s9, 16  }
 0x303   : > { %1296 = vsyncadd (%p1210_p2), %s914_s9, 4294967280  ;;  %p17_p3 = scmp.ge.s32.totalorder %s1381_s30, 4   ;;  %s1617_s24 = smov %s1303_s25 }
 0x304   : > { %s1618_s25 = smov %s1307_s26  ;;  %s1619_s26 = smov %s1392_s10 }
 0x305   : > { %s1620_s27 = smov %s1381_s30  ;;  %19 = sbr.rel (!%p17_p3) target bundleno = 3 (0x3), region = 86 }
 0x30a   :  { %918 = vsyncpa [#allocation3], 1 }
 0x30b   :  { %920 = vsyncpa [#allocation3 + $0x1], 1 }

</bundles_post_ra>
